<compile_context>
chip_gen: v7x
topology: tpu7x:2x2x1
jax: 0.10.0
libtpu: 0.0.40
codegen_flags: <defaults>
</compile_context>

<pallas_src>
import functools

import jax
import jax.numpy as jnp
from jax.experimental import pallas as pl
from jax.experimental.pallas import tpu as pltpu


_VMEM_LIMIT = 48 * 1024 * 1024  # conservative for v7x (64 MiB VMEM); plenty of headroom


# ----------------------------------------------------------------------------
# Tile-size helpers (always return a divisor of `d`, or `d` itself = full dim).
# All real M/K/N in this network divide cleanly; the full-dim fallback only
# triggers for small dims (< the cap), so blocks never blow past VMEM.
# ----------------------------------------------------------------------------

def _row_tile(d, max_t):
    """Largest multiple of 8 <= max_t that divides d, else the full dim."""
    if d <= max_t:
        return d
    t = max_t - max_t % 8
    while t >= 8:
        if d % t == 0:
            return t
        t -= 8
    return d


def _lane_tile(d, max_t):
    """Largest multiple of 128 <= max_t that divides d, else the full dim."""
    if d <= max_t:
        return d
    t = max_t - max_t % 128
    while t >= 128:
        if d % t == 0:
            return t
        t -= 128
    return d


# ----------------------------------------------------------------------------
# Pallas kernels
# ----------------------------------------------------------------------------

def _matmul_affine_kernel(*refs, relu, residual):
    """bf16 (M,K)@(K,N), f32 acc, fused per-column affine (+residual) (+ReLU)."""
    if residual:
        x_ref, w_ref, scale_ref, shift_ref, r_ref, o_ref, acc_ref = refs
    else:
        x_ref, w_ref, scale_ref, shift_ref, o_ref, acc_ref = refs
        r_ref = None

    @pl.when(pl.program_id(2) == 0)
    def _():
        acc_ref[...] = jnp.zeros_like(acc_ref)

    acc_ref[...] += jnp.dot(x_ref[...], w_ref[...],
                            preferred_element_type=jnp.float32)

    @pl.when(pl.program_id(2) == pl.num_programs(2) - 1)
    def _():
        y = acc_ref[...] * scale_ref[...] + shift_ref[...]
        if residual:
            y = y + r_ref[...].astype(jnp.float32)
        if relu:
            y = jnp.maximum(y, 0.0)
        o_ref[...] = y.astype(o_ref.dtype)


def _conv_tap_kernel(x_ref, w_ref, scale_ref, shift_ref, o_ref, acc_ref,
                     *, kh, kw, wp, m, n_img, relu):
    """Stride-1 KxK conv via per-tap MXU matmuls on row-flattened padded input.

    x_ref:   (n_img, rows_in, ck)  bf16 zero-padded activations, rows flattened
    w_ref:   (kh*kw, ck, cn)       bf16 weights, one (ck, cn) matrix per tap
    o_ref:   (n_img, m, cn)        bf16, m = H*wp rows (junk right-edge cols incl.)
    acc_ref: (n_img, m, cn)        f32 accumulator across the cin grid axis
    """
    @pl.when(pl.program_id(1) == 0)
    def _():
        acc_ref[...] = jnp.zeros_like(acc_ref)

    for n in range(n_img):
        for di in range(kh):
            for dj in range(kw):
                lhs = x_ref[n, pl.ds(di * wp + dj, m), :]   # static, wp % 8 == 0
                acc_ref[n] += jnp.dot(lhs, w_ref[di * kw + dj],
                                      preferred_element_type=jnp.float32)

    @pl.when(pl.program_id(1) == pl.num_programs(1) - 1)
    def _():
        for n in range(n_img):
            y = acc_ref[n] * scale_ref[...] + shift_ref[...]
            if relu:
                y = jnp.maximum(y, 0.0)
            o_ref[n] = y.astype(o_ref.dtype)


def _maxpool_tap_kernel(x_ref, o_ref, *, wp, m):
    """3x3 stride-1 max over 9 taps of the row-flattened padded input."""
    r = x_ref[0, pl.ds(0, m), :]
    for di in range(3):
        for dj in range(3):
            if di == 0 and dj == 0:
                continue
            r = jnp.maximum(r, x_ref[0, pl.ds(di * wp + dj, m), :])
    o_ref[0] = r


def _gap_kernel(x_ref, o_ref):
    # x_ref: (1, H*W, C) bf16 -> mean over spatial in f32
    o_ref[0] = jnp.mean(x_ref[0].astype(jnp.float32), axis=0, keepdims=True)


def _threshold_kernel(x_ref, o_ref):
    o_ref[...] = (x_ref[...] > 0.5).astype(o_ref.dtype)


# ----------------------------------------------------------------------------
# Kernel wrappers
# ----------------------------------------------------------------------------

@functools.partial(jax.jit, static_argnames=("relu", "out_dtype"))
def matmul_affine(x, w, scale, shift, residual=None, *, relu, out_dtype=jnp.bfloat16):
    """out = relu?((x @ w) * scale + shift [+ residual]); bf16 in, f32 epilogue."""
    M, K = x.shape
    _, N = w.shape
    tm = _row_tile(M, 512)
    tk = _lane_tile(K, 512)
    tn = _lane_tile(N, 512)
    has_res = residual is not None

    in_specs = [
        pl.BlockSpec((tm, tk), lambda i, j, k: (i, k)),
        pl.BlockSpec((tk, tn), lambda i, j, k: (k, j)),
        pl.BlockSpec((1, tn), lambda i, j, k: (0, j)),
        pl.BlockSpec((1, tn), lambda i, j, k: (0, j)),
    ]
    args = [x.astype(jnp.bfloat16), w.astype(jnp.bfloat16), scale, shift]
    if has_res:
        # Same block as the output; constant over k -> fetched once per (i, j).
        in_specs.append(pl.BlockSpec((tm, tn), lambda i, j, k: (i, j)))
        args.append(residual.astype(jnp.bfloat16))

    return pl.pallas_call(
        functools.partial(_matmul_affine_kernel, relu=relu, residual=has_res),
        out_shape=jax.ShapeDtypeStruct((M, N), out_dtype),
        grid_spec=pltpu.PrefetchScalarGridSpec(
            num_scalar_prefetch=0,
            grid=(M // tm, N // tn, K // tk),
            in_specs=in_specs,
            out_specs=pl.BlockSpec((tm, tn), lambda i, j, k: (i, j)),
            scratch_shapes=[pltpu.VMEM((tm, tn), jnp.float32)],
        ),
        compiler_params=pltpu.CompilerParams(
            dimension_semantics=("parallel", "parallel", "arbitrary"),
            vmem_limit_bytes=_VMEM_LIMIT),
    )(*args)


@functools.partial(jax.jit, static_argnames=("kh", "kw", "relu"))
def conv_bn_s1(x, w3, scale, shift, *, kh, kw, relu):
    """Stride-1 'same' KxK conv + folded BN (+ReLU) on NHWC, no im2col in HBM."""
    N, H, W, C = x.shape
    Cout = w3.shape[-1]
    ph, pw = (kh - 1) // 2, (kw - 1) // 2
    # Round the padded width up to a multiple of 8: tap offsets then have at most
    # kw sublane-alignment classes instead of kh*kw (fewer VMEM relayouts).
    Wp = ((W + 2 * pw + 7) // 8) * 8
    pr = Wp - W - pw
    # Bottom padding kh - ph = ph + 1 guard row keeps every flattened tap offset
    # in bounds (the overrun only feeds junk right-edge columns, sliced off below).
    xp = jnp.pad(x.astype(jnp.bfloat16),
                 ((0, 0), (ph, kh - ph), (pw, pr), (0, 0)))
    rows_in = (H + kh) * Wp
    xp = xp.reshape(N, rows_in, C)
    m = H * Wp                       # output rows incl. junk right-edge columns
    cn = _lane_tile(Cout, 512)
    ck = _lane_tile(C, 512)

    out = pl.pallas_call(
        functools.partial(_conv_tap_kernel, kh=kh, kw=kw, wp=Wp, m=m,
                          n_img=N, relu=relu),
        out_shape=jax.ShapeDtypeStruct((N, m, Cout), jnp.bfloat16),
        grid_spec=pltpu.PrefetchScalarGridSpec(
            num_scalar_prefetch=0,
            # Batch is folded into the kernel -> weight tiles are DMA'd once per
            # (Cout-tile, Cin-tile) instead of once per image.
            grid=(Cout // cn, C // ck),
            in_specs=[
                pl.BlockSpec((N, rows_in, ck), lambda j, k: (0, 0, k)),
                pl.BlockSpec((kh * kw, ck, cn), lambda j, k: (0, k, j)),
                pl.BlockSpec((1, cn), lambda j, k: (0, j)),
                pl.BlockSpec((1, cn), lambda j, k: (0, j)),
            ],
            out_specs=pl.BlockSpec((N, m, cn), lambda j, k: (0, 0, j)),
            scratch_shapes=[pltpu.VMEM((N, m, cn), jnp.float32)],
        ),
        compiler_params=pltpu.CompilerParams(
            dimension_semantics=("parallel", "arbitrary"),
            vmem_limit_bytes=_VMEM_LIMIT),
    )(xp, w3, scale, shift)

    out = out.reshape(N, H, Wp, Cout)
    return out[:, :, :W, :]          # drop junk right-edge columns


@jax.jit
def maxpool_3x3_s2(x):
    """nn.MaxPool2d(3, stride=2, padding=1) on NHWC (post-ReLU input, so zero
    padding == -inf padding)."""
    N, H, W, C = x.shape
    Wp = ((W + 2 + 7) // 8) * 8      # sublane-aligned padded width
    pr = Wp - W - 1
    xp = jnp.pad(x, ((0, 0), (1, 2), (1, pr), (0, 0))).reshape(N, (H + 3) * Wp, C)
    m = H * Wp
    out = pl.pallas_call(
        functools.partial(_maxpool_tap_kernel, wp=Wp, m=m),
        out_shape=jax.ShapeDtypeStruct((N, m, C), x.dtype),
        grid=(N,),
        in_specs=[pl.BlockSpec((1, (H + 3) * Wp, C), lambda n: (n, 0, 0))],
        out_specs=pl.BlockSpec((1, m, C), lambda n: (n, 0, 0)),
        compiler_params=pltpu.CompilerParams(
            dimension_semantics=("parallel",),
            vmem_limit_bytes=_VMEM_LIMIT),
    )(xp)
    # stride-1 3x3 max -> drop junk columns and decimate by 2 (cheap XLA slice)
    return out.reshape(N, H, Wp, C)[:, ::2, 0:W:2, :]


@jax.jit
def global_avg_pool(x):
    """AdaptiveAvgPool2d(1) + flatten: (N,H,W,C) -> (N,C) in f32."""
    N, H, W, C = x.shape
    xr = x.reshape(N, H * W, C)
    out = pl.pallas_call(
        _gap_kernel,
        out_shape=jax.ShapeDtypeStruct((N, 1, C), jnp.float32),
        grid=(N,),
        in_specs=[pl.BlockSpec((1, H * W, C), lambda n: (n, 0, 0))],
        out_specs=pl.BlockSpec((1, 1, C), lambda n: (n, 0, 0)),
        compiler_params=pltpu.CompilerParams(
            dimension_semantics=("parallel",),
            vmem_limit_bytes=_VMEM_LIMIT),
    )(xr)
    return out.reshape(N, C)


@jax.jit
def skeletonize(img):
    # TODO(synk): the reference module calls an external `skeletonize` (morphological
    # thinning) that is not defined in the module; approximated by a per-pixel binary
    # threshold so the structure branch still exercises the full backbone.
    N, H, W, C = img.shape
    flat = img.reshape(N, H * W * C)        # lane-dense layout for the threshold
    out = pl.pallas_call(
        _threshold_kernel,
        out_shape=jax.ShapeDtypeStruct(flat.shape, flat.dtype),
        compiler_params=pltpu.CompilerParams(vmem_limit_bytes=_VMEM_LIMIT),
    )(flat)
    return out.reshape(N, H, W, C)


# ----------------------------------------------------------------------------
# ResNet-50 backbone (glue in plain JAX, compute in the Pallas kernels above)
# ----------------------------------------------------------------------------

@functools.partial(jax.jit, static_argnums=(1, 2, 3, 4))
def _im2col(x, kh, kw, stride, pad):
    """im2col, only used for conv1 (7x7/s2, 3 channels -> tiny duplication)."""
    N, H, W, C = x.shape
    Ho = (H + 2 * pad - kh) // stride + 1
    Wo = (W + 2 * pad - kw) // stride + 1
    xp = jnp.pad(x, ((0, 0), (pad, pad), (pad, pad), (0, 0)))
    cols = [xp[:, i:i + stride * Ho:stride, j:j + stride * Wo:stride, :]
            for i in range(kh) for j in range(kw)]
    return jnp.concatenate(cols, axis=-1).reshape(N * Ho * Wo, kh * kw * C)


def conv_bn(x, p, stride, relu, residual=None):
    kh, kw = p["kh"], p["kw"]
    if kh == 1 and kw == 1:
        if stride != 1:
            x = x[:, ::stride, ::stride, :]
        N, H, W, C = x.shape
        res2d = residual.reshape(N * H * W, -1) if residual is not None else None
        y = matmul_affine(x.reshape(N * H * W, C), p["w"], p["scale"], p["shift"],
                          res2d, relu=relu, out_dtype=jnp.bfloat16)
        return y.reshape(N, H, W, -1)
    if kh == 3 and kw == 3:
        # stride-2 3x3 == stride-1 3x3 decimated at even rows/cols (no im2col).
        y = conv_bn_s1(x, p["w"], p["scale"], p["shift"], kh=kh, kw=kw, relu=relu)
        if stride != 1:
            y = y[:, ::stride, ::stride, :]
        return y
    # conv1 7x7/s2: im2col keeps the MXU contraction deep (K=147); the 3-channel
    # input makes the duplicated patches cheap.
    N, H, W, _ = x.shape
    pad = (kh - 1) // 2
    Ho = (H + 2 * pad - kh) // stride + 1
    Wo = (W + 2 * pad - kw) // stride + 1
    patches = _im2col(x.astype(jnp.bfloat16), kh, kw, stride, pad)
    y = matmul_affine(patches, p["w"], p["scale"], p["shift"],
                      relu=relu, out_dtype=jnp.bfloat16)
    return y.reshape(N, Ho, Wo, -1)


def bottleneck(x, blk):
    s = blk["stride"]
    identity = conv_bn(x, blk["ds"], s, relu=False) if "ds" in blk else x
    out = conv_bn(x, blk["c1"], 1, relu=True)       # 1x1 reduce
    out = conv_bn(out, blk["c2"], s, relu=True)     # 3x3
    # 1x1 expand with residual add + ReLU fused into the matmul epilogue.
    return conv_bn(out, blk["c3"], 1, relu=True, residual=identity)


def visual_extractor(params, x):
    x = conv_bn(x, params["conv1"], 2, relu=True)   # 7x7/s2 + BN + ReLU
    x = maxpool_3x3_s2(x)                           # 3x3/s2 maxpool
    for stage in params["stages"]:
        for blk in stage:
            x = bottleneck(x, blk)
    return global_avg_pool(x)                       # (batch, 2048) f32


def content_encoder_forward(params, img_nchw):
    img = jnp.transpose(img_nchw, (0, 2, 3, 1)).astype(jnp.float32)  # NCHW -> NHWC
    skel = skeletonize(img)
    # Run the shared backbone once on [image ; skeleton] (halves weight traffic,
    # doubles matmul M), then split the pooled features.
    feats = visual_extractor(params, jnp.concatenate([img, skel], axis=0))
    n = img.shape[0]
    vis_feat = feats[:n]                                             # (N, 2048) f32
    struc_feat = matmul_affine(feats[n:], params["fc_w"], params["fc_scale"],
                               params["fc_shift"], relu=False,
                               out_dtype=jnp.float32)                # (N, out_dim)
    return {"visual": vis_feat, "structure": struc_feat}


# ----------------------------------------------------------------------------
# Deterministic synthetic parameters, pre-packed into the kernel layouts
# ----------------------------------------------------------------------------

def _conv_bn_params(key, kh, kw, cin, cout, *, im2col=False):
    k1, k2, k3, k4, k5 = jax.random.split(key, 5)
    w = jax.random.normal(k1, (kh, kw, cin, cout), jnp.float32) * jnp.sqrt(2.0 / (kh * kw * cin))
    gamma = jax.random.uniform(k2, (cout,), jnp.float32, 0.5, 1.5)
    beta = 0.1 * jax.random.normal(k3, (cout,), jnp.float32)
    mean = 0.1 * jax.random.normal(k4, (cout,), jnp.float32)
    var = jax.random.uniform(k5, (cout,), jnp.float32, 0.5, 1.5)
    scale = gamma / jnp.sqrt(var + 1e-5)          # eval-mode BN folded to affine
    shift = beta - mean * scale
    if kh * kw == 1:
        w_packed = w.reshape(cin, cout).astype(jnp.bfloat16)              # matmul layout
    elif im2col:
        w_packed = w.reshape(kh * kw * cin, cout).astype(jnp.bfloat16)    # im2col layout
    else:
        w_packed = w.reshape(kh * kw, cin, cout).astype(jnp.bfloat16)     # tap layout
    return {"w": w_packed, "scale": scale.reshape(1, cout),
            "shift": shift.reshape(1, cout), "kh": kh, "kw": kw}


def make_content_encoder_params(key, out_dim=256):
    keys = iter(jax.random.split(key, 128))
    params = {"conv1": _conv_bn_params(next(keys), 7, 7, 3, 64, im2col=True)}
    stages = []
    in_c = 64
    for li, (nblocks, width) in enumerate([(3, 64), (4, 128), (6, 256), (3, 512)]):
        stage_stride = 1 if li == 0 else 2
        blocks = []
        for b in range(nblocks):
            s = stage_stride if b == 0 else 1
            cin = in_c if b == 0 else width * 4
            blk = {
                "c1": _conv_bn_params(next(keys), 1, 1, cin, width),
                "c2": _conv_bn_params(next(keys), 3, 3, width, width),
                "c3": _conv_bn_params(next(keys), 1, 1, width, width * 4),
                "stride": s,
            }
            if s != 1 or cin != width * 4:
                blk["ds"] = _conv_bn_params(next(keys), 1, 1, cin, width * 4)
            blocks.append(blk)
        in_c = width * 4
        stages.append(blocks)
    params["stages"] = stages
    kf1, kf2 = jax.random.split(next(keys))
    bound = 1.0 / jnp.sqrt(2048.0)
    params["fc_w"] = jax.random.uniform(
        kf1, (2048, out_dim), jnp.float32, -bound, bound).astype(jnp.bfloat16)
    params["fc_scale"] = jnp.ones((1, out_dim), jnp.float32)
    params["fc_shift"] = jax.random.uniform(
        kf2, (out_dim,), jnp.float32, -bound, bound).reshape(1, out_dim)
    return params


# ----------------------------------------------------------------------------

if __name__ == "__main__":
    key = jax.random.PRNGKey(0)
    pkey, xkey = jax.random.split(key)
    params = make_content_encoder_params(pkey, out_dim=256)

    # Small but ResNet-50-compatible input (needs >=32 spatial for the /32 stride).
    img = jax.random.uniform(xkey, (2, 3, 64, 64), jnp.float32)   # NCHW, like PyTorch

    out = content_encoder_forward(params, img)
    jax.block_until_ready(out)

    assert out["visual"].shape == (2, 2048) and out["visual"].dtype == jnp.float32
    assert out["structure"].shape == (2, 256) and out["structure"].dtype == jnp.float32
    print("KERNEL_OK")
</pallas_src>

<mosaic_0001>
module attributes {stable_mosaic.version = 11 : i64} {
  func.func @_threshold_kernel(%arg0: memref<2x12288xf32, #tpu.memory_space<vmem>>, %arg1: memref<2x12288xf32, #tpu.memory_space<vmem>>) attributes {dimension_semantics = [], scalar_prefetch = 0 : i64, scratch_operands = 0 : i64, tpu.core_type = #tpu.core_type<tc>} {
    %c0 = arith.constant 0 : index
    %c0_0 = arith.constant 0 : index
    %0 = vector.load %arg0[%c0, %c0_0] : memref<2x12288xf32, #tpu.memory_space<vmem>>, vector<2x12288xf32>
    %cst = arith.constant 5.000000e-01 : f32
    %1 = vector.broadcast %cst : f32 to vector<2x12288xf32>
    %2 = arith.cmpf ogt, %0, %1 : vector<2x12288xf32>
    %3 = arith.extui %2 : vector<2x12288xi1> to vector<2x12288xi32>
    %4 = arith.sitofp %3 : vector<2x12288xi32> to vector<2x12288xf32>
    %c0_1 = arith.constant 0 : index
    %c0_2 = arith.constant 0 : index
    %5 = vector.load %arg1[%c0_1, %c0_2] : memref<2x12288xf32, #tpu.memory_space<vmem>>, vector<2x12288xf32>
    tpu.vector_store %arg1[%c0_1, %c0_2], %4 {strides = array<i32>} : memref<2x12288xf32, #tpu.memory_space<vmem>>, vector<2x12288xf32>,
    return
  }
}

</mosaic_0001>

<bundles_post_ra>
// kernel: skeletonize.1
= control target key start
LH: loop header
LB: loop body
LE: loop exit
PB: predicated region body
PF: predicated region fallthrough
CT: control target
= control target key end

     0   :  { %v157_v6 = vmov 0.0   ;;  %s336_s0 = inlined_call_operand.vmem [shape: f32[2,12288], index: 0, kind: input, shape index: {}]   ;;  %s337_s1 = inlined_call_operand.vmem [shape: f32[2,12288], index: 1, kind: output, shape index: {}]  }
   0x1   :  { %v8_v0 = vld [vmem:[%s336_s0] sm:$0xff]  ;;  %v9_v1 = vld [vmem:[%s336_s0 + $0x8] sm:$0xff]  ;;  %v10_v2 = vld [vmem:[%s336_s0 + $0x10] sm:$0xff] }
   0x2   :  { %vm32_vm0 = vcmp.gt.f32.partialorder %v8_v0, 0.5  ;;  %vm33_vm1 = vcmp.gt.f32.partialorder %v9_v1, 0.5  ;;  %vm34_vm2 = vcmp.gt.f32.partialorder %v10_v2, 0.5  ;;  %v11_v3 = vld [vmem:[%s336_s0 + $0x18] sm:$0xff]  ;;  %v12_v4 = vld [vmem:[%s336_s0 + $0x20] sm:$0xff]  ;;  %v13_v5 = vld [vmem:[%s336_s0 + $0x28] sm:$0xff] }
   0x3   :  { %v132_v7 = vsel %vm32_vm0, 1.0, %v157_v6  ;;  %v133_v8 = vsel %vm33_vm1, 1.0, %v157_v6  ;;  %v134_v9 = vsel %vm34_vm2, 1.0, %v157_v6  ;;  %vm35_vm3 = vcmp.gt.f32.partialorder %v11_v3, 0.5  ;;  %v14_v10 = vld [vmem:[%s336_s0 + $0x30] sm:$0xff]  ;;  %v15_v11 = vld [vmem:[%s336_s0 + $0x38] sm:$0xff] }
   0x4   :  { %104 = vst [vmem:[%s337_s1] sm:$0xff] %v132_v7  ;;  %105 = vst [vmem:[%s337_s1 + $0x8] sm:$0xff] %v133_v8  ;;  %v135_v12 = vsel %vm35_vm3, 1.0, %v157_v6  ;;  %vm36_vm4 = vcmp.gt.f32.partialorder %v12_v4, 0.5  ;;  %vm37_vm5 = vcmp.gt.f32.partialorder %v13_v5, 0.5  ;;  %vm38_vm6 = vcmp.gt.f32.partialorder %v14_v10, 0.5  ;;  %v16_v13 = vld [vmem:[%s336_s0 + $0x40] sm:$0xff] }
   0x5   :  { %106 = vst [vmem:[%s337_s1 + $0x10] sm:$0xff] %v134_v9  ;;  %v17_v14 = vld [vmem:[%s336_s0 + $0x48] sm:$0xff]  ;;  %107 = vst [vmem:[%s337_s1 + $0x18] sm:$0xff] %v135_v12  ;;  %v136_v15 = vsel %vm36_vm4, 1.0, %v157_v6  ;;  %v137_v16 = vsel %vm37_vm5, 1.0, %v157_v6  ;;  %v138_v17 = vsel %vm38_vm6, 1.0, %v157_v6 }
   0x6   :  { %vm39_vm7 = vcmp.gt.f32.partialorder %v15_v11, 0.5  ;;  %v18_v18 = vld [vmem:[%s336_s0 + $0x50] sm:$0xff]  ;;  %v19_v19 = vld [vmem:[%s336_s0 + $0x58] sm:$0xff]  ;;  %108 = vst [vmem:[%s337_s1 + $0x20] sm:$0xff] %v136_v15  ;;  %109 = vst [vmem:[%s337_s1 + $0x28] sm:$0xff] %v137_v16  ;;  %vm40_vm8 = vcmp.gt.f32.partialorder %v16_v13, 0.5 }
   0x7   :  { %110 = vst [vmem:[%s337_s1 + $0x30] sm:$0xff] %v138_v17  ;;  %v139_v20 = vsel %vm39_vm7, 1.0, %v157_v6  ;;  %vm41_vm9 = vcmp.gt.f32.partialorder %v17_v14, 0.5  ;;  %vm42_vm10 = vcmp.gt.f32.partialorder %v18_v18, 0.5  ;;  %v20_v21 = vld [vmem:[%s336_s0 + $0x60] sm:$0xff]  ;;  %v21_v22 = vld [vmem:[%s336_s0 + $0x68] sm:$0xff] }
   0x8   :  { %111 = vst [vmem:[%s337_s1 + $0x38] sm:$0xff] %v139_v20  ;;  %v140_v23 = vsel %vm40_vm8, 1.0, %v157_v6  ;;  %v141_v24 = vsel %vm41_vm9, 1.0, %v157_v6  ;;  %v142_v25 = vsel %vm42_vm10, 1.0, %v157_v6  ;;  %vm43_vm11 = vcmp.gt.f32.partialorder %v19_v19, 0.5  ;;  %v22_v26 = vld [vmem:[%s336_s0 + $0x70] sm:$0xff] }
   0x9   :  { %v23_v27 = vld [vmem:[%s336_s0 + $0x78] sm:$0xff]  ;;  %112 = vst [vmem:[%s337_s1 + $0x40] sm:$0xff] %v140_v23  ;;  %113 = vst [vmem:[%s337_s1 + $0x48] sm:$0xff] %v141_v24  ;;  %v143_v28 = vsel %vm43_vm11, 1.0, %v157_v6  ;;  %vm44_vm12 = vcmp.gt.f32.partialorder %v20_v21, 0.5  ;;  %vm45_vm13 = vcmp.gt.f32.partialorder %v21_v22, 0.5 }
   0xa   :  { %114 = vst [vmem:[%s337_s1 + $0x50] sm:$0xff] %v142_v25  ;;  %vm46_vm14 = vcmp.gt.f32.partialorder %v22_v26, 0.5  ;;  %v24_v29 = vld [vmem:[%s336_s0 + $0x80] sm:$0xff]  ;;  %v25_v30 = vld [vmem:[%s336_s0 + $0x88] sm:$0xff]  ;;  %115 = vst [vmem:[%s337_s1 + $0x58] sm:$0xff] %v143_v28  ;;  %v144_v31 = vsel %vm44_vm12, 1.0, %v157_v6 }
   0xb   :  { %v145_v32 = vsel %vm45_vm13, 1.0, %v157_v6  ;;  %v146_v33 = vsel %vm46_vm14, 1.0, %v157_v6  ;;  %vm47_vm15 = vcmp.gt.f32.partialorder %v23_v27, 0.5  ;;  %v26_v34 = vld [vmem:[%s336_s0 + $0x90] sm:$0xff]  ;;  %v27_v35 = vld [vmem:[%s336_s0 + $0x98] sm:$0xff]  ;;  %116 = vst [vmem:[%s337_s1 + $0x60] sm:$0xff] %v144_v31 }
   0xc   :  { %117 = vst [vmem:[%s337_s1 + $0x68] sm:$0xff] %v145_v32  ;;  %118 = vst [vmem:[%s337_s1 + $0x70] sm:$0xff] %v146_v33  ;;  %v147_v36 = vsel %vm47_vm15, 1.0, %v157_v6  ;;  %vm48_vm0 = vcmp.gt.f32.partialorder %v24_v29, 0.5  ;;  %vm49_vm1 = vcmp.gt.f32.partialorder %v25_v30, 0.5  ;;  %vm50_vm2 = vcmp.gt.f32.partialorder %v26_v34, 0.5 }
   0xd   :  { %v28_v37 = vld [vmem:[%s336_s0 + $0xa0] sm:$0xff]  ;;  %v29_v38 = vld [vmem:[%s336_s0 + $0xa8] sm:$0xff]  ;;  %119 = vst [vmem:[%s337_s1 + $0x78] sm:$0xff] %v147_v36  ;;  %v148_v39 = vsel %vm48_vm0, 1.0, %v157_v6  ;;  %v149_v40 = vsel %vm49_vm1, 1.0, %v157_v6  ;;  %v150_v41 = vsel %vm50_vm2, 1.0, %v157_v6 }
   0xe   :  { %vm51_vm3 = vcmp.gt.f32.partialorder %v27_v35, 0.5  ;;  %v30_v42 = vld [vmem:[%s336_s0 + $0xb0] sm:$0xff]  ;;  %v31_v43 = vld [vmem:[%s336_s0 + $0xb8] sm:$0xff]  ;;  %120 = vst [vmem:[%s337_s1 + $0x80] sm:$0xff] %v148_v39  ;;  %121 = vst [vmem:[%s337_s1 + $0x88] sm:$0xff] %v149_v40  ;;  %vm52_vm4 = vcmp.gt.f32.partialorder %v28_v37, 0.5 }
   0xf   :  { %122 = vst [vmem:[%s337_s1 + $0x90] sm:$0xff] %v150_v41  ;;  %v151_v44 = vsel %vm51_vm3, 1.0, %v157_v6  ;;  %vm53_vm5 = vcmp.gt.f32.partialorder %v29_v38, 0.5  ;;  %vm54_vm6 = vcmp.gt.f32.partialorder %v30_v42, 0.5  ;;  %v152_v45 = vsel %vm52_vm4, 1.0, %v157_v6 }
  0x10   :  { %123 = vst [vmem:[%s337_s1 + $0x98] sm:$0xff] %v151_v44  ;;  %v153_v46 = vsel %vm53_vm5, 1.0, %v157_v6  ;;  %v154_v47 = vsel %vm54_vm6, 1.0, %v157_v6  ;;  %vm55_vm7 = vcmp.gt.f32.partialorder %v31_v43, 0.5  ;;  %124 = vst [vmem:[%s337_s1 + $0xa0] sm:$0xff] %v152_v45 }
  0x11   :  { %125 = vst [vmem:[%s337_s1 + $0xa8] sm:$0xff] %v153_v46  ;;  %126 = vst [vmem:[%s337_s1 + $0xb0] sm:$0xff] %v154_v47  ;;  %v155_v48 = vsel %vm55_vm7, 1.0, %v157_v6 }
  0x12   :  { %127 = vst [vmem:[%s337_s1 + $0xb8] sm:$0xff] %v155_v48 }

</bundles_post_ra>
